<compile_context>
chip_gen: v5e
topology: v5e:2x2
jax: 0.10.0
libtpu: 0.0.40
codegen_flags: <defaults>
</compile_context>

<pallas_src>
import functools
import os

import jax
import jax.numpy as jnp
from jax import lax
from jax.experimental import pallas as pl
from jax.experimental.pallas import tpu as pltpu

LANES = 1024           # lane-dense slab width (multiple of 128)
MAX_BLOCK_ROWS = 512   # 512 x 1024 f32 = 2 MiB per block


def _uniform_noise_from_bits(bits_u32, a, out_dtype, bitcast_fn):
    """uint32 bits -> a * U[0,1) - a/2 via the 23-bit-mantissa trick.

    fbits carries the exponent for [1, 2), so  a*f - 1.5a == a*(f-1) - a/2
    (the two constant subtractions are folded into one).
    """
    fbits = (bits_u32 >> jnp.uint32(9)) | jnp.uint32(0x3F800000)
    f = bitcast_fn(fbits, jnp.float32)              # uniform in [1, 2)
    noise = jnp.float32(a) * f - jnp.float32(1.5 * a)
    return noise.astype(out_dtype)


def _noise_kernel_hw_prng(seed_ref, x_ref, out_ref, *, a):
    """TPU path: on-chip hardware PRNG, no extra HBM operand."""
    # Independent, decorrelated stream per grid step.
    pltpu.prng_seed(seed_ref[0] + pl.program_id(0) * jnp.int32(1000003))
    bits = pltpu.prng_random_bits(x_ref.shape)
    if bits.dtype != jnp.uint32:
        bits = pltpu.bitcast(bits, jnp.uint32)
    noise = _uniform_noise_from_bits(bits, a, out_ref.dtype, pltpu.bitcast)
    out_ref[...] = x_ref[...] + noise


def _noise_kernel_bits(x_ref, bits_ref, out_ref, *, a):
    """Portable path (interpret mode / non-TPU): random bits streamed in."""
    noise = _uniform_noise_from_bits(
        bits_ref[...], a, out_ref.dtype, lax.bitcast_convert_type)
    out_ref[...] = x_ref[...] + noise


def _use_hw_prng():
    """Use the Mosaic-only hardware PRNG only when really lowering to TPU."""
    if jax.default_backend() != "tpu":
        return False
    if os.environ.get("JAX_PALLAS_FORCE_INTERPRET", "").lower() in ("1", "true"):
        return False
    try:
        if jax.config.jax_pallas_force_interpret:
            return False
    except Exception:
        pass
    return True


def add_uniform_noise(x, L, seed=0):
    """Forward of Noise(L): x + uniform noise in [-a/2, a/2), a = 2/(L-1)."""
    a = 2.0 / (float(L) - 1.0)
    orig_shape = x.shape
    dtype = x.dtype
    n = int(x.size)
    if n == 0:
        return x

    itemsize = jnp.dtype(dtype).itemsize
    sublane = {4: 8, 2: 16, 1: 32}.get(itemsize, 8)

    rows = pl.cdiv(n, LANES)
    n_pad = rows * LANES

    xf = x.reshape(-1)
    if n_pad != n:
        # Only the ragged (< LANES-element) tail is padded; no round-up to a
        # block_rows multiple (Pallas masks the partial last grid block).
        # TODO(synk): a bulk/tail split would remove this extra pad+slice HBM
        # pass entirely for large misaligned tensors.
        xf = jnp.pad(xf, (0, n_pad - n))
    x2d = xf.reshape(rows, LANES)

    # Block size: 2 MiB f32 blocks amortize per-grid-step overhead, fit v5e's
    # 16 MiB scoped-VMEM default double-buffered, and are clamped so the grid
    # keeps >=2 steps (v7x shares the parallel axis across its 2 TensorCores).
    if rows <= sublane:
        block_rows = rows                       # block == full dim (legal)
    else:
        half = -(-((rows + 1) // 2) // sublane) * sublane
        block_rows = min(MAX_BLOCK_ROWS, half)

    grid = (pl.cdiv(rows, block_rows),)
    data_spec = pl.BlockSpec((block_rows, LANES), lambda i: (i, 0))
    out_shape = jax.ShapeDtypeStruct((rows, LANES), dtype)

    if _use_hw_prng():
        seed_arr = jnp.asarray([seed], dtype=jnp.int32)
        out2d = pl.pallas_call(
            functools.partial(_noise_kernel_hw_prng, a=a),
            out_shape=out_shape,
            grid=grid,
            in_specs=[
                pl.BlockSpec(memory_space=pltpu.MemorySpace.SMEM),  # seed
                data_spec,
            ],
            out_specs=data_spec,
            compiler_params=pltpu.CompilerParams(
                dimension_semantics=("parallel",)),
        )(seed_arr, x2d)
    else:
        # Portable fallback: same math, random bits generated by jax.random.
        bits = jax.random.bits(jax.random.PRNGKey(seed), (rows, LANES), jnp.uint32)
        out2d = pl.pallas_call(
            functools.partial(_noise_kernel_bits, a=a),
            out_shape=out_shape,
            grid=grid,
            in_specs=[data_spec, data_spec],
            out_specs=data_spec,
        )(x2d, bits)

    if n_pad != n:
        return out2d.reshape(-1)[:n].reshape(orig_shape)
    return out2d.reshape(orig_shape)


if __name__ == "__main__":
    key = jax.random.PRNGKey(0)
    # NCHW conv-activation-like input, small shape.
    x = jax.random.normal(key, (2, 4, 16, 16), dtype=jnp.float32)

    L = 8
    a = 2.0 / (L - 1)

    out = jax.block_until_ready(add_uniform_noise(x, L, seed=0))

    assert out.shape == x.shape and out.dtype == x.dtype

    # TODO(synk): torch.rand's exact RNG stream can't be reproduced; validate
    # the U[-a/2, a/2) distribution of the additive noise instead.
    noise = out - x
    eps = 1e-5
    assert bool(jnp.all(noise >= -a / 2 - eps)), "noise below -a/2"
    assert bool(jnp.all(noise <= a / 2 + eps)), "noise above a/2"
    assert bool(jnp.any(jnp.abs(noise) > 1e-6)), "noise was not applied"
    # mean ~ 0 and std ~ a/sqrt(12) (loose bounds, 2048 samples)
    assert abs(float(jnp.mean(noise))) < 0.1 * a, "noise mean off"
    std = float(jnp.std(noise))
    target_std = a / (12.0 ** 0.5)
    assert 0.6 * target_std < std < 1.4 * target_std, "noise std off"

    print("KERNEL_OK")
</pallas_src>

<mosaic_0001>
module attributes {stable_mosaic.version = 11 : i64} {
  func.func @_noise_kernel_bits(%arg0: i32, %arg1: memref<2x1024xf32, #tpu.memory_space<vmem>>, %arg2: memref<2x1024xi32, #tpu.memory_space<vmem>>, %arg3: memref<2x1024xf32, #tpu.memory_space<vmem>>) attributes {dimension_semantics = [#tpu.dimension_semantics<arbitrary>], iteration_bounds = array<i64: 1>, scalar_prefetch = 0 : i64, scratch_operands = 0 : i64, tpu.core_type = #tpu.core_type<tc>, window_params = [{transform_indices = @transform_0, window_bounds = array<i64: 2, 1024>}, {transform_indices = @transform_1, window_bounds = array<i64: 2, 1024>}, {transform_indices = @transform_2, window_bounds = array<i64: 2, 1024>}]} {
    %c0 = arith.constant 0 : index
    %c0_0 = arith.constant 0 : index
    %0 = vector.load %arg2[%c0, %c0_0] : memref<2x1024xi32, #tpu.memory_space<vmem>>, vector<2x1024xi32>
    %c9_i32 = arith.constant 9 : i32
    %1 = vector.broadcast %c9_i32 : i32 to vector<2x1024xi32>
    %2 = arith.shrui %0, %1 : vector<2x1024xi32>
    %c1065353216_i32 = arith.constant 1065353216 : i32
    %3 = vector.broadcast %c1065353216_i32 : i32 to vector<2x1024xi32>
    %4 = arith.ori %2, %3 : vector<2x1024xi32>
    %5 = tpu.bitcast %4 : vector<2x1024xi32> -> vector<2x1024xf32>
    %cst = arith.constant 0.285714298 : f32
    %6 = vector.broadcast %cst : f32 to vector<2x1024xf32>
    %7 = arith.mulf %6, %5 : vector<2x1024xf32>
    %cst_1 = arith.constant 0.428571433 : f32
    %8 = vector.broadcast %cst_1 : f32 to vector<2x1024xf32>
    %9 = arith.subf %7, %8 : vector<2x1024xf32>
    %c0_2 = arith.constant 0 : index
    %c0_3 = arith.constant 0 : index
    %10 = vector.load %arg1[%c0_2, %c0_3] : memref<2x1024xf32, #tpu.memory_space<vmem>>, vector<2x1024xf32>
    %11 = arith.addf %10, %9 : vector<2x1024xf32>
    %c0_4 = arith.constant 0 : index
    %c0_5 = arith.constant 0 : index
    %12 = vector.load %arg3[%c0_4, %c0_5] : memref<2x1024xf32, #tpu.memory_space<vmem>>, vector<2x1024xf32>
    tpu.vector_store %arg3[%c0_4, %c0_5], %11 {strides = array<i32>} : memref<2x1024xf32, #tpu.memory_space<vmem>>, vector<2x1024xf32>,
    return
  }
  func.func @transform_0(%arg0: i32) -> (i32, i32) {
    %c0_i32 = arith.constant 0 : i32
    %c0_i32_0 = arith.constant 0 : i32
    return %arg0, %c0_i32 : i32, i32
  }
  func.func @transform_1(%arg0: i32) -> (i32, i32) {
    %c0_i32 = arith.constant 0 : i32
    %c0_i32_0 = arith.constant 0 : i32
    return %arg0, %c0_i32 : i32, i32
  }
  func.func @transform_2(%arg0: i32) -> (i32, i32) {
    %c0_i32 = arith.constant 0 : i32
    %c0_i32_0 = arith.constant 0 : i32
    return %arg0, %c0_i32 : i32, i32
  }
}

</mosaic_0001>

<bundles_post_ra>
// kernel: tpu_custom_call.1
= control target key start
LH: loop header
LB: loop body
LE: loop exit
PB: predicated region body
PF: predicated region fallthrough
CT: control target
= control target key end

     0   :  { %7 = vsyncpa [#allocation3], 0  ;;  %s252_s0 = inlined_call_operand.hbm [shape: f32[2,1024], index: 0, kind: input, shape index: {}]   ;;  %s253_s1 = inlined_call_operand.hbm [shape: u32[2,1024], index: 1, kind: input, shape index: {}]   ;;  %s254_s2 = inlined_call_operand.hbm [shape: f32[2,1024], index: 2, kind: output, shape index: {}]  }
   0x1   :  { %8 = vsyncpa [#allocation6], 0 }
   0x2   :  { %9 = vsyncpa [#allocation4], 0  ;;  %s15_s11 = sshll.u32 %s252_s0, 4  ;;  %s219_s12 = smov [#allocation2]   ;;  %s16_s11 = int_to_ptr.hbm [resolvable:$true] %s15_s11 }
   0x3   :  { %s17_s13 = sshll.u32 %s219_s12, 4  ;;  %s26_s16 = sshll.u32 %s253_s1, 4  ;;  %s18_s13 = int_to_ptr.vmem [resolvable:$true] %s17_s13  ;;  %s27_s16 = int_to_ptr.hbm [resolvable:$true] %s26_s16 }
   0x4   :  { %20 = dma.hbm_to_vmem [thread:$0]  %s16_s11, 256, %s18_s13, [#allocation3]  }
   0x5   :  { %s220_s17 = smov [#allocation5]  }
   0x6   :  { %s28_s18 = sshll.u32 %s220_s17, 4  ;;  %s29_s18 = int_to_ptr.vmem [resolvable:$true] %s28_s18 }
   0x7   :  { %31 = dma.hbm_to_vmem [thread:$0]  %s27_s16, 256, %s29_s18, [#allocation6]  }
   0x8   :  { %213 = dma.done.wait [#allocation3], 256  }
   0x9   :  { %214 = vsyncadd [#allocation3], 4294967040 }
   0xa   :  { %215 = dma.done.wait [#allocation6], 256  }
   0xb   :  { %216 = vsyncadd [#allocation6], 4294967040  ;;  %v40_v0 = vld [vmem:[#allocation5] sm:$0xff]  ;;  %v41_v1 = vld [vmem:[#allocation5 + $0x8] sm:$0xff]  ;;  %vm97_vm0 = vcmask 1041408   ;;  %vm99_vm1 = vcmask 1045508  }
   0xc   :  { %v42_v2 = vshrl.u32 %v40_v0, 9  ;;  %v43_v3 = vshrl.u32 %v41_v1, 9  ;;  %vm101_vm2 = vcmask 1043456   ;;  %v81_v20 = vld [vmem:[#allocation2] sm:$0xff]  ;;  %v82_v41 = vld [vmem:[#allocation2 + $0x8] sm:$0xff]  ;;  %s221_s0 = smov [#allocation7]  }
   0xd   :  { %s117_s1 = sshll.u32 %s221_s0, 4  ;;  %s119_s21 = sshll.u32 %s254_s2, 4  ;;  %s118_s1 = int_to_ptr.vmem [resolvable:$true] %s117_s1  ;;  %s120_s21 = int_to_ptr.hbm [resolvable:$true] %s119_s21 }
   0xe   :  { %v44_v4 = vor.u32 1065353216, %v42_v2  ;;  %v45_v5 = vor.u32 1065353216, %v43_v3 }
  0x10   :  { %46 = vst [vmem:[#allocation1] ss:$4 sm:$0xff] %v44_v4 }
  0x11   :  { %48 = vst [vmem:[#allocation1 + $0x20] ss:$4 sm:$0xff] %v45_v5 }
  0x17   :  { %v49_v6 = vld.sshfl [vmem:[#allocation1] sm:$0xff pattern:$0x73625140]  ;;  %v50_v7 = vld.sshfl [vmem:[#allocation1 + $0x8] sm:$0xff pattern:$0x73625140] }
  0x18   :  { %v51_v8 = vld.sshfl [vmem:[#allocation1 + $0x10] sm:$0xff pattern:$0x73625140]  ;;  %v52_v9 = vld.sshfl [vmem:[#allocation1 + $0x18] sm:$0xff pattern:$0x73625140] }
  0x19   :  { %v65_v10 = vmul.f32 0.2857143, %v49_v6  ;;  %v66_v11 = vmul.f32 0.2857143, %v50_v7  ;;  %v67_v12 = vmul.f32 0.2857143, %v51_v8 }
  0x1a   :  { %v68_v13 = vmul.f32 0.2857143, %v52_v9  ;;  %v53_v14 = vld.sshfl [vmem:[#allocation1 + $0x20] sm:$0xff pattern:$0x73625140] }
  0x1b   :  { %v130_v15 = vadd.f32 -0.42857143, %v65_v10  ;;  %v131_v16 = vadd.f32 -0.42857143, %v66_v11  ;;  %v132_v17 = vadd.f32 -0.42857143, %v67_v12 }
  0x1c   :  { %v133_v18 = vadd.f32 -0.42857143, %v68_v13  ;;  %v54_v19 = vld.sshfl [vmem:[#allocation1 + $0x28] sm:$0xff pattern:$0x73625140] }
  0x1d   :  { %v91_v21 = vrot.slane %v131_v16, 6  ;;  %v92_v22 = vrot.slane %v132_v17, 4  ;;  %v55_v23 = vld.sshfl [vmem:[#allocation1 + $0x30] sm:$0xff pattern:$0x73625140] }
  0x1e   :  { %v93_v24 = vrot.slane %v133_v18, 2  ;;  %v56_v25 = vld.sshfl [vmem:[#allocation1 + $0x38] sm:$0xff pattern:$0x73625140]  ;;  %v69_v26 = vmul.f32 0.2857143, %v53_v14 }
  0x1f   :  { %v98_v27 = vsel %vm97_vm0, %v130_v15, %v91_v21  ;;  %v70_v28 = vmul.f32 0.2857143, %v54_v19  ;;  %v71_v29 = vmul.f32 0.2857143, %v55_v23  ;;  %v72_v30 = vmul.f32 0.2857143, %v56_v25 }
  0x20   :  { %v100_v31 = vsel %vm99_vm1, %v92_v22, %v93_v24  ;;  %v134_v37 = vadd.f32 -0.42857143, %v69_v26 }
  0x21   :  { %v102_v32 = vsel %vm101_vm2, %v98_v27, %v100_v31  ;;  %v135_v33 = vadd.f32 -0.42857143, %v70_v28  ;;  %v136_v34 = vadd.f32 -0.42857143, %v71_v29  ;;  %v137_v35 = vadd.f32 -0.42857143, %v72_v30 }
  0x22   :  { %v108_v36 = vadd.f32 %v102_v32, %v81_v20 }
  0x23   :  { %v94_v38 = vrot.slane %v135_v33, 6  ;;  %v95_v39 = vrot.slane %v136_v34, 4  ;;  %v96_v40 = vrot.slane %v137_v35, 2 }
  0x24   :  { %110 = vst [vmem:[#allocation7] sm:$0xff] %v108_v36 }
  0x25   :  { %v103_v42 = vsel %vm97_vm0, %v134_v37, %v94_v38  ;;  %v104_v43 = vsel %vm99_vm1, %v95_v39, %v96_v40 }
  0x26   :  { %v105_v44 = vsel %vm101_vm2, %v103_v42, %v104_v43 }
  0x27   :  { %v109_v45 = vadd.f32 %v105_v44, %v82_v41 }
  0x29   :  { %111 = vst [vmem:[#allocation7 + $0x8] sm:$0xff] %v109_v45 }
  0x2a   :  { %122 = dma.vmem_to_hbm [thread:$0]  %s118_s1, 256, %s120_s21, [#allocation4]  }
  0x2b   :  { %217 = dma.done.wait [#allocation4], 256  }
  0x2c   :  { %218 = vsyncadd [#allocation4], 4294967040 }
  0x2d   :  { %127 = vsyncpa [#allocation3], 1 }
  0x2e   :  { %128 = vsyncpa [#allocation6], 1 }
  0x2f   :  { %129 = vsyncpa [#allocation4], 1 }

</bundles_post_ra>
